<compile_context>
chip_gen: v7x
topology: tpu7x:2x2x1
jax: 0.10.0
libtpu: 0.0.40
codegen_flags: <defaults>
</compile_context>

<pallas_src>
import functools

import jax
import jax.numpy as jnp
from jax.experimental import pallas as pl
from jax.experimental.pallas import tpu as pltpu


def _round_up(x, m):
    return (x + m - 1) // m * m


# ----------------------------------------------------------------------------
# Pallas kernel: per-class [masked dice-loss sum, mask sum] over points.
# ----------------------------------------------------------------------------
def _dice_sums_kernel(smooth, exponent, ignore_index,
                      logits_ref, target_ref, maskbits_ref,
                      out_ref, loss_acc, mask_acc):
    i = pl.program_id(1)                       # inner (point-tile) axis

    @pl.when(i == 0)
    def _():
        loss_acc[...] = jnp.zeros_like(loss_acc)
        mask_acc[...] = jnp.zeros_like(mask_acc)

    x = logits_ref[...].astype(jnp.float32)    # [C, TP] logits (upcast in-kernel)
    tgt = target_ref[...]                      # [1, TP] int32 labels
    C, TP = x.shape

    # One-hot target rebuilt in-kernel (no HBM traffic for it).
    cls = jax.lax.broadcasted_iota(jnp.int32, (C, TP), 0)
    valid = tgt != ignore_index                               # [1, TP]
    t = jnp.where((cls == tgt) & valid, 1.0, 0.0)             # [C, TP]

    # Unpack bit-packed pos + sampled-neg mask: bit c of word c // 32.
    W = maskbits_ref.shape[0]
    parts = []
    for w in range(W):                                        # static Python loop
        n = min(32, C - 32 * w)
        word = maskbits_ref[pl.ds(w, 1), :]                   # [1, TP] int32
        bit = jax.lax.broadcasted_iota(jnp.int32, (n, TP), 0)
        parts.append(jnp.right_shift(word, bit) & 1)          # [n, TP]
    m_bits = parts[0] if W == 1 else jnp.concatenate(parts, axis=0)
    m = m_bits.astype(jnp.float32)                            # [C, TP]

    # softmax over the class axis (sublanes) == F.softmax(input, dim=1)
    x_max = jnp.max(x, axis=0, keepdims=True)
    e = jnp.exp(x - x_max)
    p = e * pl.reciprocal(jnp.sum(e, axis=0, keepdims=True), approx=True)

    # BinaryDiceLoss per element; t is one-hot so t**exponent == t.
    num = 2.0 * p * t + smooth
    p_pow = p * p if exponent == 2 else p ** exponent
    den = p_pow + t + smooth
    loss = 1.0 - num * pl.reciprocal(den, approx=True)        # [C, TP]

    loss_acc[...] += jnp.sum(loss * m, axis=1, keepdims=True)  # [C, 1]
    mask_acc[...] += jnp.sum(m, axis=1, keepdims=True)         # [C, 1]

    # Epilogue: single tiny write per output block.
    @pl.when(i == pl.num_programs(1) - 1)
    def _():
        out_ref[...] = jnp.concatenate(
            [loss_acc[...], mask_acc[...]], axis=1)[None]      # (1, C, 2)


def _auto_tile_p(C, vmem_budget_bytes=6 << 20):
    """Largest lane tile whose double-buffered input set fits ~vmem_budget."""
    W = (C + 31) // 32
    bytes_per_point = 4 * (C + W + 1)          # f32 logits + i32 maskbits + i32 label
    tp = vmem_budget_bytes // (2 * bytes_per_point)   # x2 for double buffering
    return max(512, min(int(tp), 1 << 16))


def _dice_sums(logits_cp, target_row, maskbits, *, smooth, exponent,
               ignore_index, tile_p=None):
    """logits_cp: [C, P] float, target_row: [1, P] int32, maskbits: [W, P] int32.

    Returns [n_split, C, 2] with [:, :, 0] = sum(loss*mask), [:, :, 1] = sum(mask).
    """
    C, P = logits_cp.shape
    if tile_p is None:
        tile_p = _auto_tile_p(C)
    tile_p = max(128, _round_up(min(tile_p, _round_up(P, 128)), 128))
    n_tiles = pl.cdiv(P, tile_p)
    # Split the point axis across the two TensorCores of a v7x chip (harmless
    # serial loop on single-TC v5e/v6e).
    n_split = 2 if n_tiles >= 2 else 1
    n_tiles = _round_up(n_tiles, n_split)
    p_pad = n_tiles * tile_p
    if p_pad != P:
        pad = p_pad - P
        logits_cp = jnp.pad(logits_cp, ((0, 0), (0, pad)))
        maskbits = jnp.pad(maskbits, ((0, 0), (0, pad)))
        target_row = jnp.pad(target_row, ((0, 0), (0, pad)),
                             constant_values=ignore_index)
    inner = n_tiles // n_split
    W = maskbits.shape[0]

    kernel = functools.partial(_dice_sums_kernel, float(smooth),
                               int(exponent), int(ignore_index))

    return pl.pallas_call(
        kernel,
        out_shape=jax.ShapeDtypeStruct((n_split, C, 2), jnp.float32),
        grid_spec=pltpu.PrefetchScalarGridSpec(
            num_scalar_prefetch=0,
            grid=(n_split, inner),
            in_specs=[
                pl.BlockSpec((C, tile_p), lambda s, i: (0, s * inner + i)),
                pl.BlockSpec((1, tile_p), lambda s, i: (0, s * inner + i)),
                pl.BlockSpec((W, tile_p), lambda s, i: (0, s * inner + i)),
            ],
            out_specs=pl.BlockSpec((1, C, 2), lambda s, i: (s, 0, 0)),
            scratch_shapes=[pltpu.VMEM((C, 1), jnp.float32),
                            pltpu.VMEM((C, 1), jnp.float32)],
        ),
        compiler_params=pltpu.CompilerParams(
            dimension_semantics=("parallel", "arbitrary")),
    )(logits_cp, target_row, maskbits)


# ----------------------------------------------------------------------------
# JAX glue: random negative sampling + bit packing + per-class combine.
# ----------------------------------------------------------------------------
def _sample_masks(target, key, num_classes, ignore_index):
    """[C, P] bool mask: positives + up to 3*n_pos uniformly random negatives.

    TODO(synk): torch.randperm's exact RNG stream cannot be bit-matched; this
    draws a uniform random subset of negatives with the same distribution.
    """
    P = target.shape[0]
    valid = target != ignore_index
    classes = jnp.arange(num_classes, dtype=target.dtype)
    keys = jax.random.split(key, num_classes)

    def per_class(k, c):
        pos = valid & (target == c)
        neg = valid & (target != c)
        n_pos = jnp.sum(pos)
        n_neg = jnp.sum(neg)
        tot = jnp.minimum(3 * n_pos, n_neg)
        scores = jnp.where(neg, jax.random.uniform(k, (P,)), jnp.inf)
        # One sort + threshold instead of a double argsort.
        sorted_scores = jnp.sort(scores)
        thresh = sorted_scores[jnp.clip(tot, 0, P - 1)]
        sel_neg = neg & (scores < thresh)
        return pos | sel_neg

    return jax.vmap(per_class)(keys, classes)          # [C, P] bool


def _pack_mask_bits(mask_cp):
    """[C, P] bool -> [ceil(C/32), P] int32 with bit c of word c//32 = mask[c]."""
    C, P = mask_cp.shape
    W = (C + 31) // 32
    padded = jnp.pad(mask_cp, ((0, W * 32 - C), (0, 0))).reshape(W, 32, P)
    shifts = jnp.left_shift(jnp.uint32(1), jnp.arange(32, dtype=jnp.uint32))
    words = jnp.sum(padded.astype(jnp.uint32) * shifts[None, :, None], axis=1,
                    dtype=jnp.uint32)
    return jax.lax.bitcast_convert_type(words, jnp.int32)


def dice_loss_v1(logits, target, key, *, ignore_index, smooth=1.0, exponent=2,
                 tile_p=None):
    """JAX/Pallas equivalent of DiceLossV1(ignore_index, smooth, exponent)(logits, target).

    logits: [P, C] float logits per point; target: [P] int class labels.
    Rows with target == ignore_index are excluded (emulated via masking so
    shapes stay static).
    """
    P, C = logits.shape
    mask_cp = _sample_masks(target, key, C, ignore_index)        # [C, P] bool
    maskbits = _pack_mask_bits(mask_cp)                          # [W, P] int32
    # TODO(synk): in production the producer should emit class-major [C, P]
    # logits directly; this transpose is one extra XLA pass over the logits.
    logits_cp = jnp.transpose(logits)                            # [C, P]
    target_row = target.astype(jnp.int32).reshape(1, P)          # [1, P]

    sums = _dice_sums(logits_cp, target_row, maskbits, smooth=smooth,
                      exponent=exponent, ignore_index=ignore_index,
                      tile_p=tile_p)                             # [n_split, C, 2]
    sums = jnp.sum(sums, axis=0)                                 # [C, 2]
    loss_sum, mask_sum = sums[:, 0], sums[:, 1]
    dice_per_class = loss_sum / (mask_sum + 1e-10)               # BinaryDiceLoss 'mean'
    keep = (jnp.arange(C) != ignore_index).astype(jnp.float32)   # skip i == ignore_index
    total_loss = jnp.sum(dice_per_class * keep)
    return total_loss / C                                        # divide by full class count


# ----------------------------------------------------------------------------
# Pure-JAX reference (same mask) for a self-check.
# ----------------------------------------------------------------------------
def _dice_loss_reference(logits, target, mask_cp, *, ignore_index, smooth, exponent):
    P, C = logits.shape
    valid = target != ignore_index
    p = jax.nn.softmax(logits.astype(jnp.float32), axis=1)
    onehot = ((target[:, None] == jnp.arange(C)[None, :]) &
              valid[:, None]).astype(jnp.float32)
    m = mask_cp.astype(jnp.float32).T                            # [P, C]
    num = 2.0 * p * onehot + smooth
    den = p ** exponent + onehot ** exponent + smooth
    loss = 1.0 - num / den
    loss_sum = jnp.sum(loss * m, axis=0)
    mask_sum = jnp.sum(m, axis=0)
    dice = loss_sum / (mask_sum + 1e-10)
    keep = (jnp.arange(C) != ignore_index).astype(jnp.float32)
    return jnp.sum(dice * keep) / C


if __name__ == "__main__":
    P, C = 800, 4            # small, non-multiple-of-tile shape (exercises padding,
    ignore_index = 2         # multi-tile grid and the 2-way point split)

    key = jax.random.PRNGKey(0)
    k_logits, k_target, k_sample = jax.random.split(key, 3)
    logits = jax.random.normal(k_logits, (P, C), dtype=jnp.float32)
    target = jax.random.randint(k_target, (P,), 0, C, dtype=jnp.int32)

    loss = dice_loss_v1(logits, target, k_sample, ignore_index=ignore_index,
                        smooth=1.0, exponent=2, tile_p=256)
    loss = jax.block_until_ready(loss)
    assert jnp.isfinite(loss)

    # Sanity check against the pure-JAX reference (same sampling mask).
    mask_cp = _sample_masks(target, k_sample, C, ignore_index)
    ref = _dice_loss_reference(logits, target, mask_cp,
                               ignore_index=ignore_index, smooth=1.0, exponent=2)
    assert abs(float(loss) - float(ref)) < 2e-2, (float(loss), float(ref))

    print("KERNEL_OK")
</pallas_src>

<mosaic_0001>
module attributes {stable_mosaic.version = 11 : i64} {
  func.func @_dice_sums_kernel(%arg0: i32, %arg1: i32, %arg2: memref<4x256xf32, #tpu.memory_space<vmem>>, %arg3: memref<1x256xi32, #tpu.memory_space<vmem>>, %arg4: memref<1x256xi32, #tpu.memory_space<vmem>>, %arg5: memref<1x4x2xf32, #tpu.memory_space<vmem>>, %arg6: memref<4x1xf32, #tpu.memory_space<vmem>>, %arg7: memref<4x1xf32, #tpu.memory_space<vmem>>) attributes {dimension_semantics = [#tpu.dimension_semantics<parallel>, #tpu.dimension_semantics<arbitrary>], iteration_bounds = array<i64: 2, 2>, scalar_prefetch = 0 : i64, scratch_operands = 2 : i64, tpu.core_type = #tpu.core_type<tc>, window_params = [{transform_indices = @transform_0, window_bounds = array<i64: 4, 256>}, {transform_indices = @transform_1, window_bounds = array<i64: 1, 256>}, {transform_indices = @transform_2, window_bounds = array<i64: 1, 256>}, {transform_indices = @transform_3, window_bounds = array<i64: 1, 4, 2>}]} {
    %c0_i32 = arith.constant 0 : i32
    %0 = arith.cmpi eq, %arg1, %c0_i32 : i32
    %1 = arith.extui %0 : i1 to i32
    %c0_i32_0 = arith.constant 0 : i32
    %2 = arith.cmpi ne, %1, %c0_i32_0 : i32
    scf.if %2 {
      %cst_25 = arith.constant 0.000000e+00 : f32
      %59 = vector.broadcast %cst_25 : f32 to vector<4x1xf32>
      %c0_26 = arith.constant 0 : index
      %c0_27 = arith.constant 0 : index
      %60 = vector.load %arg6[%c0_26, %c0_27] : memref<4x1xf32, #tpu.memory_space<vmem>>, vector<4x1xf32>
      tpu.vector_store %arg6[%c0_26, %c0_27], %59 {strides = array<i32>} : memref<4x1xf32, #tpu.memory_space<vmem>>, vector<4x1xf32>,
      %cst_28 = arith.constant 0.000000e+00 : f32
      %61 = vector.broadcast %cst_28 : f32 to vector<4x1xf32>
      %c0_29 = arith.constant 0 : index
      %c0_30 = arith.constant 0 : index
      %62 = vector.load %arg7[%c0_29, %c0_30] : memref<4x1xf32, #tpu.memory_space<vmem>>, vector<4x1xf32>
      tpu.vector_store %arg7[%c0_29, %c0_30], %61 {strides = array<i32>} : memref<4x1xf32, #tpu.memory_space<vmem>>, vector<4x1xf32>,
    } else {
    }
    %c0 = arith.constant 0 : index
    %c0_1 = arith.constant 0 : index
    %3 = vector.load %arg2[%c0, %c0_1] : memref<4x256xf32, #tpu.memory_space<vmem>>, vector<4x256xf32>
    %c0_2 = arith.constant 0 : index
    %c0_3 = arith.constant 0 : index
    %4 = vector.load %arg3[%c0_2, %c0_3] : memref<1x256xi32, #tpu.memory_space<vmem>>, vector<1x256xi32>
    %5 = tpu.iota {dimensions = array<i32: 0>} : vector<4x256xi32>
    %c2_i32 = arith.constant 2 : i32
    %6 = vector.broadcast %c2_i32 : i32 to vector<1x256xi32>
    %7 = arith.cmpi ne, %4, %6 : vector<1x256xi32>
    %8 = vector.broadcast %4 : vector<1x256xi32> to vector<4x256xi32>
    %9 = arith.cmpi eq, %5, %8 : vector<4x256xi32>
    %10 = vector.broadcast %7 : vector<1x256xi1> to vector<4x256xi1>
    %11 = arith.andi %9, %10 : vector<4x256xi1>
    %cst = arith.constant 1.000000e+00 : f32
    %cst_4 = arith.constant 0.000000e+00 : f32
    %12 = vector.broadcast %cst : f32 to vector<4x256xf32>
    %13 = vector.broadcast %cst_4 : f32 to vector<4x256xf32>
    %14 = arith.select %11, %12, %13 : vector<4x256xi1>, vector<4x256xf32>
    %c0_5 = arith.constant 0 : index
    %c0_6 = arith.constant 0 : index
    %15 = vector.load %arg4[%c0_5, %c0_6] : memref<1x256xi32, #tpu.memory_space<vmem>>, vector<1x256xi32>
    %16 = tpu.iota {dimensions = array<i32: 0>} : vector<4x256xi32>
    %17 = vector.broadcast %15 : vector<1x256xi32> to vector<4x256xi32>
    %18 = arith.shrsi %17, %16 : vector<4x256xi32>
    %c1_i32 = arith.constant 1 : i32
    %19 = vector.broadcast %c1_i32 : i32 to vector<4x256xi32>
    %20 = arith.andi %18, %19 : vector<4x256xi32>
    %21 = arith.sitofp %20 : vector<4x256xi32> to vector<4x256xf32>
    %cst_7 = arith.constant dense<0xFF800000> : vector<256xf32>
    %22 = vector.multi_reduction <maximumf>, %3, %cst_7 [0] : vector<4x256xf32> to vector<256xf32>
    %23 = vector.shape_cast %22 : vector<256xf32> to vector<1x256xf32>
    %24 = vector.broadcast %23 : vector<1x256xf32> to vector<4x256xf32>
    %25 = arith.subf %3, %24 : vector<4x256xf32>
    %26 = math.exp %25 : vector<4x256xf32>
    %cst_8 = arith.constant dense<0.000000e+00> : vector<256xf32>
    %27 = vector.multi_reduction <add>, %26, %cst_8 [0] : vector<4x256xf32> to vector<256xf32>
    %28 = vector.shape_cast %27 : vector<256xf32> to vector<1x256xf32>
    %29 = tpu.reciprocal %28 {approx = true} : vector<1x256xf32> -> vector<1x256xf32>
    %30 = vector.broadcast %29 : vector<1x256xf32> to vector<4x256xf32>
    %31 = arith.mulf %26, %30 : vector<4x256xf32>
    %cst_9 = arith.constant 2.000000e+00 : f32
    %32 = vector.broadcast %cst_9 : f32 to vector<4x256xf32>
    %33 = arith.mulf %32, %31 : vector<4x256xf32>
    %34 = arith.mulf %33, %14 : vector<4x256xf32>
    %cst_10 = arith.constant 1.000000e+00 : f32
    %35 = vector.broadcast %cst_10 : f32 to vector<4x256xf32>
    %36 = arith.addf %34, %35 : vector<4x256xf32>
    %37 = arith.mulf %31, %31 : vector<4x256xf32>
    %38 = arith.addf %37, %14 : vector<4x256xf32>
    %cst_11 = arith.constant 1.000000e+00 : f32
    %39 = vector.broadcast %cst_11 : f32 to vector<4x256xf32>
    %40 = arith.addf %38, %39 : vector<4x256xf32>
    %41 = tpu.reciprocal %40 {approx = true} : vector<4x256xf32> -> vector<4x256xf32>
    %42 = arith.mulf %36, %41 : vector<4x256xf32>
    %cst_12 = arith.constant 1.000000e+00 : f32
    %43 = vector.broadcast %cst_12 : f32 to vector<4x256xf32>
    %44 = arith.subf %43, %42 : vector<4x256xf32>
    %c0_13 = arith.constant 0 : index
    %c0_14 = arith.constant 0 : index
    %45 = vector.load %arg6[%c0_13, %c0_14] : memref<4x1xf32, #tpu.memory_space<vmem>>, vector<4x1xf32>
    %46 = arith.mulf %44, %21 : vector<4x256xf32>
    %cst_15 = arith.constant dense<0.000000e+00> : vector<4xf32>
    %47 = vector.multi_reduction <add>, %46, %cst_15 [1] : vector<4x256xf32> to vector<4xf32>
    %48 = vector.shape_cast %47 : vector<4xf32> to vector<4x1xf32>
    %49 = arith.addf %45, %48 : vector<4x1xf32>
    %c0_16 = arith.constant 0 : index
    %c0_17 = arith.constant 0 : index
    %50 = vector.load %arg6[%c0_16, %c0_17] : memref<4x1xf32, #tpu.memory_space<vmem>>, vector<4x1xf32>
    tpu.vector_store %arg6[%c0_16, %c0_17], %49 {strides = array<i32>} : memref<4x1xf32, #tpu.memory_space<vmem>>, vector<4x1xf32>,
    %c0_18 = arith.constant 0 : index
    %c0_19 = arith.constant 0 : index
    %51 = vector.load %arg7[%c0_18, %c0_19] : memref<4x1xf32, #tpu.memory_space<vmem>>, vector<4x1xf32>
    %cst_20 = arith.constant dense<0.000000e+00> : vector<4xf32>
    %52 = vector.multi_reduction <add>, %21, %cst_20 [1] : vector<4x256xf32> to vector<4xf32>
    %53 = vector.shape_cast %52 : vector<4xf32> to vector<4x1xf32>
    %54 = arith.addf %51, %53 : vector<4x1xf32>
    %c0_21 = arith.constant 0 : index
    %c0_22 = arith.constant 0 : index
    %55 = vector.load %arg7[%c0_21, %c0_22] : memref<4x1xf32, #tpu.memory_space<vmem>>, vector<4x1xf32>
    tpu.vector_store %arg7[%c0_21, %c0_22], %54 {strides = array<i32>} : memref<4x1xf32, #tpu.memory_space<vmem>>, vector<4x1xf32>,
    %c1_i32_23 = arith.constant 1 : i32
    %56 = arith.cmpi eq, %arg1, %c1_i32_23 : i32
    %57 = arith.extui %56 : i1 to i32
    %c0_i32_24 = arith.constant 0 : i32
    %58 = arith.cmpi ne, %57, %c0_i32_24 : i32
    scf.if %58 {
      %c0_25 = arith.constant 0 : index
      %c0_26 = arith.constant 0 : index
      %59 = vector.load %arg6[%c0_25, %c0_26] : memref<4x1xf32, #tpu.memory_space<vmem>>, vector<4x1xf32>
      %c0_27 = arith.constant 0 : index
      %c0_28 = arith.constant 0 : index
      %60 = vector.load %arg7[%c0_27, %c0_28] : memref<4x1xf32, #tpu.memory_space<vmem>>, vector<4x1xf32>
      %61 = tpu.concatenate %59, %60 in 1 : vector<4x1xf32>, vector<4x1xf32> -> vector<4x2xf32>
      %62 = vector.shape_cast %61 : vector<4x2xf32> to vector<1x4x2xf32>
      %c0_29 = arith.constant 0 : index
      %c0_30 = arith.constant 0 : index
      %c0_31 = arith.constant 0 : index
      %63 = vector.load %arg5[%c0_29, %c0_30, %c0_31] : memref<1x4x2xf32, #tpu.memory_space<vmem>>, vector<1x4x2xf32>
      tpu.vector_store %arg5[%c0_29, %c0_30, %c0_31], %62 {strides = array<i32>} : memref<1x4x2xf32, #tpu.memory_space<vmem>>, vector<1x4x2xf32>,
    } else {
    }
    return
  }
  func.func @transform_0(%arg0: i32, %arg1: i32) -> (i32, i32) {
    %c2_i32 = arith.constant 2 : i32
    %0 = arith.muli %arg0, %c2_i32 : i32
    %1 = arith.addi %0, %arg1 : i32
    %c0_i32 = arith.constant 0 : i32
    %c0_i32_0 = arith.constant 0 : i32
    return %c0_i32, %1 : i32, i32
  }
  func.func @transform_1(%arg0: i32, %arg1: i32) -> (i32, i32) {
    %c2_i32 = arith.constant 2 : i32
    %0 = arith.muli %arg0, %c2_i32 : i32
    %1 = arith.addi %0, %arg1 : i32
    %c0_i32 = arith.constant 0 : i32
    %c0_i32_0 = arith.constant 0 : i32
    return %c0_i32, %1 : i32, i32
  }
  func.func @transform_2(%arg0: i32, %arg1: i32) -> (i32, i32) {
    %c2_i32 = arith.constant 2 : i32
    %0 = arith.muli %arg0, %c2_i32 : i32
    %1 = arith.addi %0, %arg1 : i32
    %c0_i32 = arith.constant 0 : i32
    %c0_i32_0 = arith.constant 0 : i32
    return %c0_i32, %1 : i32, i32
  }
  func.func @transform_3(%arg0: i32, %arg1: i32) -> (i32, i32, i32) {
    %c0_i32 = arith.constant 0 : i32
    %c0_i32_0 = arith.constant 0 : i32
    %c0_i32_1 = arith.constant 0 : i32
    return %arg0, %c0_i32, %c0_i32_0 : i32, i32, i32
  }
}

</mosaic_0001>

<bundles_post_ra>
// kernel: tpu_custom_call.1
= control target key start
LH: loop header
LB: loop body
LE: loop exit
PB: predicated region body
PF: predicated region fallthrough
CT: control target
= control target key end

     0   :  { %s1143_s0 = inlined_call_operand.hbm [shape: f32[4,1024], index: 0, kind: input, shape index: {}]   ;;  %s1144_s1 = inlined_call_operand.hbm [shape: s32[1,1024], index: 1, kind: input, shape index: {}]   ;;  %s1145_s2 = inlined_call_operand.hbm [shape: s32[1,1024], index: 2, kind: input, shape index: {}]   ;;  %s1146_s3 = inlined_call_operand.vmem [shape: f32[2,4,2], index: 3, kind: output, shape index: {}]  }
   0x1   :  { %1153 = sst [smem:[#allocation13_spill]] %s1144_s1 }
   0x2   :  { %8 = vsyncpa [#allocation5], 0 }
   0x3   :  { %10 = vsyncpa [#allocation5 + $0x1], 0 }
   0x4   :  { %11 = vsyncpa [#allocation7], 0 }
   0x5   :  { %13 = vsyncpa [#allocation7 + $0x1], 0  ;;  %s894_s12 = smov 0   ;;  %s896_s13 = smov 0  }
   0x6   :  { %s898_s14 = smov 0   ;;  %s900_s15 = smov 0  }
   0x7   :  { %s902_s16 = smov 0   ;;  %s904_s17 = smov 0  }
   0x8   :  { %s906_s18 = smov 0   ;;  %s908_s19 = smov 0  }
   0x9 LB: > { %s1147_s20 = sadd.s32 4294967295, %s865_s19   ;;  %s28_s21 = sadd.s32 1, %s857_s17  ;;  %s865_s19 = sphi %s908_s19, %s19_s19   ;;  %s861_s18 = sphi %s906_s18, %s1174_s18   ;;  %s857_s17 = sphi %s904_s17, %s1173_s17   ;;  %s853_s16 = sphi %s902_s16, %s1172_s16   ;;  %s849_s15 = sphi %s900_s15, %s1171_s15   ;;  %s845_s14 = sphi %s898_s14, %s1170_s14   ;;  %s841_s13 = sphi %s896_s13, %s1169_s13   ;;  %s837_s12 = sphi %s894_s12, %s1168_s12  }
   0xa   : > { %p29_p0 = scmp.ge.s32.totalorder %s28_s21, 2  ;;  %s31_s22 = sadd.s32 1, %s861_s18 }
   0xb   : > { %s579_s23 = sshll.u32 %s861_s18, 1  ;;  %s42_s24 = sadd.s32 1, %s845_s14 }
   0xc   : > { %s1176_s21 = smov (%p29_p0, %s28_s21), 0  ;;  %s1178_s22 = smov (!%p29_p0, %s31_s22), %s861_s18 }
   0xd   : > { %1154 = sst [smem:[#allocation11_spill]] %s1176_s21  ;;  %s941_s25 = sadd.s32 %s857_s17, %s579_s23 }
   0xe   : > { %p49_p1 = scmp.ne.s32.totalorder %s845_s14, %s841_s13  ;;  %p33_p2 = scmp.ge.s32.totalorder %s1178_s22, 2 }
   0xf   : > { %p50_p3 = scmp.eq.s32.totalorder %s865_s19, 0  ;;  %p55_p4 = scmp.ne.s32.totalorder %s841_s13, %s837_s12 }
  0x10   : > { %p56_p5 = scmp.eq.s32.totalorder %s1147_s20, 0  ;;  %s1180_s22 = smov (%p33_p2, %s1178_s22), 0 }
  0x11   : > { %1155 = sst [smem:[#allocation12_spill]] %s1180_s22  ;;  %p51_p6 = por %p50_p3, %p49_p1 }
  0x12   : > { %p951_p7 = por %p56_p5, %p55_p4  ;;  %s580_s27 = sshll.u32 %s1180_s22, 1 }
  0x13   : > { %s38_s28 = sadd.s32 %s580_s27, %s1176_s21  ;;  %p627_p8 = scmp.lt.s32.totalorder %s865_s19, 4 }
  0x14   : > { %s1156_s26 = scalar_select %p951_p7, 1, 0 }
  0x15   : > { %s39_s29 = ssub.s32 %s941_s25, %s38_s28  ;;  %s960_s30 = sand.u32 1, %s845_s14  }
  0x16   : > { %p40_p9 = scmp.eq.s32.totalorder %s39_s29, 0  ;;  %p962_p10 = pnand %p627_p8, %p51_p6 }
  0x17   : > { %s186_s5 = sand.u32 1, %s865_s19   ;;  %s1149_s6 = sshll.u32 %s960_s30, 1 }
  0x18   : > { %s1157_s4 = scalar_select %p962_p10, 1, 0 }
  0x19   : > { %s969_s7 = scalar_select %p40_p9, %s845_s14, %s42_s24  }
  0x1a   : > { %s609_s8 = sshll.u32 %s941_s25, 5  ;;  %s1158_s1 = sld [smem:[#allocation13_spill]] }
  0x1b   : > { %s190_s12 = scalar_lea.vmem [#allocation6], %s1149_s6  ;;  %s983_s27 = scalar_lea.sflag [#allocation7], %s186_s5 }
  0x1c   : > { %s200_s23 = sshll.u32 %s190_s12, 4  ;;  %p989_p12 = pneg %p962_p10  ;;  %s981_s23 = int_to_ptr.vmem [resolvable:$true] %s200_s23 }
  0x20   : > { %s977_s11 = scalar_lea.hbm %s1158_s1, %s609_s8  ;;  %s710_s10 = scalar_lea.hbm %s1158_s1, 128 }
  0x21   : > { %s705_s24 = scalar_lea.hbm %s977_s11, 32  ;;  %p711_p1 = scmp.lt.u32.totalorder %s977_s11, %s1158_s1 }
  0x22   : > { %p706_p11 = scmp.ne.s32.totalorder %s977_s11, %s705_s24  ;;  %p712_p2 = scmp.lt.u32.totalorder %s710_s10, %s705_s24 }
  0x23   : > { %p714_p4 = scmp.lt.u32.totalorder %s705_s24, %s977_s11 }
  0x24   : > { %p708_p13 = pnand %p989_p12, %p706_p11  ;;  %p713_p3 = por %p712_p2, %p711_p1 }
  0x26   : > { %p709_p0 = pneg %p708_p13  ;;  %p715_p5 = por %p714_p4, %p713_p3 }
  0x28   : > { %p716_p6 = pnand %p715_p5, %p709_p0 }
  0x2a   : > { %719 = shalt.err (!%p716_p6)
}
  0x2b   : > { %s720_s5 = scalar_lea.vmem %s981_s23, 32  ;;  %s867_s29 = smov [#allocation6]  }
  0x2c   : > { %p721_p8 = scmp.ne.s32.totalorder %s981_s23, %s720_s5  ;;  %s725_s9 = sshll.u32 %s867_s29, 4  ;;  %s726_s9 = int_to_ptr.vmem [resolvable:$false] %s725_s9 }
  0x2d   : > { %s727_s20 = scalar_lea.vmem %s726_s9, 64  ;;  %p728_p13 = scmp.lt.s32.totalorder %s981_s23, %s726_s9 }
  0x2e   : > { %p723_p9 = pnand %p721_p8, %p989_p12  ;;  %p729_p7 = scmp.lt.s32.totalorder %s727_s20, %s720_s5 }
  0x30   : > { %p724_p11 = pneg %p723_p9  ;;  %p730_p1 = por %p729_p7, %p728_p13 }
  0x32   : > { %p731_p2 = pnand %p730_p1, %p724_p11 }
  0x34   : > { %734 = shalt.err (!%p731_p2)
}
  0x35   : > { %623 = dma.hbm_to_vmem [thread:$0]  (!%p962_p10), %s977_s11, 32, %s981_s23, %s983_s27  }
  0x36   : > { %s1018_s12 = scalar_lea.hbm %s1145_s2, %s609_s8  ;;  %p599_p7 = scmp.ge.s32.totalorder %s865_s19, 1 }
  0x37   : > { %p226_p0 = scmp.lt.s32.totalorder %s865_s19, 5  ;;  %s587_s29 = sshll.u32 %s960_s30, 3 }
  0x38   : > { %s608_s9 = sshll.u32 %s941_s25, 7  ;;  %s169_s11 = scalar_lea.vmem [#allocation4], %s587_s29 }
  0x39   : > { %p1022_p3 = pnand %p599_p7, %p226_p0  ;;  %s1031_s1 = scalar_lea.hbm %s1143_s0, %s608_s9 }
  0x3a   : > { %s179_s8 = sshll.u32 %s169_s11, 4  ;;  %s1161_s23 = sshll.u32 %s960_s30, 1  ;;  %s1033_s8 = int_to_ptr.vmem [resolvable:$true] %s179_s8 }
  0x3b   : > { %s1160_s5 = scalar_select %p1022_p3, 1, 0 }
  0x3c   : > { %s1037_s24 = scalar_lea.vmem [#allocation8], %s1161_s23  ;;  %s166_s22 = scalar_lea.sflag [#allocation5], %s960_s30 }
  0x3d   : > { %s221_s10 = sshll.u32 %s1037_s24, 4  ;;  %s735_s25 = scalar_lea.hbm %s1031_s1, 128  ;;  %s222_s10 = int_to_ptr.vmem [resolvable:$true] %s221_s10 }
  0x3e   : > { %p736_p4 = scmp.ne.s32.totalorder %s1031_s1, %s735_s25  ;;  %s740_s20 = scalar_lea.hbm %s1143_s0, 512 }
  0x3f   : > { %p741_p8 = scmp.lt.u32.totalorder %s1031_s1, %s1143_s0  ;;  %p742_p9 = scmp.lt.u32.totalorder %s740_s20, %s735_s25 }
  0x40   : > { %p738_p5 = pnand %p736_p4, %p989_p12  ;;  %p744_p13 = scmp.lt.u32.totalorder %s735_s25, %s1031_s1 }
  0x41   : > { %p743_p11 = por %p742_p9, %p741_p8 }
  0x42   : > { %p739_p6 = pneg %p738_p5 }
  0x43   : > { %p745_p1 = por %p744_p13, %p743_p11 }
  0x45   : > { %p746_p2 = pnand %p745_p1, %p739_p6 }
  0x47   : > { %749 = shalt.err (!%p746_p2)
}
  0x48   : > { %s750_s30 = scalar_lea.vmem %s1033_s8, 128  ;;  %s868_s11 = smov [#allocation4]  }
  0x49   : > { %p751_p7 = scmp.ne.s32.totalorder %s1033_s8, %s750_s30  ;;  %s755_s23 = sshll.u32 %s868_s11, 4  ;;  %s756_s23 = int_to_ptr.vmem [resolvable:$false] %s755_s23 }
  0x4a   : > { %s757_s21 = scalar_lea.vmem %s756_s23, 256  ;;  %p758_p5 = scmp.lt.s32.totalorder %s1033_s8, %s756_s23 }
  0x4b   : > { %p753_p0 = pnand %p751_p7, %p989_p12  ;;  %p759_p3 = scmp.lt.s32.totalorder %s757_s21, %s750_s30 }
  0x4d   : > { %p754_p4 = pneg %p753_p0  ;;  %p760_p8 = por %p759_p3, %p758_p5 }
  0x4f   : > { %p761_p9 = pnand %p760_p8, %p754_p4 }
  0x51   : > { %764 = shalt.err (!%p761_p9)
}
  0x52   : > { %620 = dma.hbm_to_vmem [thread:$0]  (!%p962_p10), %s1031_s1, 128, %s1033_s8, %s166_s22  }
  0x53   : > { %s765_s25 = scalar_lea.hbm %s1018_s12, 32  ;;  %s770_s20 = scalar_lea.hbm %s1145_s2, 128 }
  0x54   : > { %p766_p6 = scmp.ne.s32.totalorder %s1018_s12, %s765_s25  ;;  %p771_p13 = scmp.lt.u32.totalorder %s1018_s12, %s1145_s2 }
  0x55   : > { %p772_p1 = scmp.lt.u32.totalorder %s770_s20, %s765_s25  ;;  %p774_p7 = scmp.lt.u32.totalorder %s765_s25, %s1018_s12 }
  0x56   : > { %p768_p11 = pnand %p766_p6, %p989_p12 }
  0x57   : > { %p773_p2 = por %p772_p1, %p771_p13 }
  0x58   : > { %p769_p3 = pneg %p768_p11 }
  0x59   : > { %p775_p0 = por %p774_p7, %p773_p2 }
  0x5b   : > { %p776_p4 = pnand %p775_p0, %p769_p3 }
  0x5d   : > { %779 = shalt.err (!%p776_p4)
}
  0x5e   : > { %s780_s1 = scalar_lea.vmem %s222_s10, 32  ;;  %s869_s22 = smov [#allocation8]  }
  0x5f   : > { %p781_p5 = scmp.ne.s32.totalorder %s222_s10, %s780_s1  ;;  %s785_s8 = sshll.u32 %s869_s22, 4  ;;  %s786_s8 = int_to_ptr.vmem [resolvable:$false] %s785_s8 }
  0x60   : > { %s787_s24 = scalar_lea.vmem %s786_s8, 64  ;;  %p788_p6 = scmp.lt.s32.totalorder %s222_s10, %s786_s8 }
  0x61   : > { %p783_p8 = pnand %p781_p5, %p989_p12  ;;  %p789_p11 = scmp.lt.s32.totalorder %s787_s24, %s780_s1 }
  0x63   : > { %p784_p9 = pneg %p783_p8  ;;  %p790_p10 = por %p789_p11, %p788_p6 }
  0x65   : > { %p791_p1 = pnand %p790_p10, %p784_p9 }
  0x67   : > { %794 = shalt.err (!%p791_p1)
}
  0x68   : > { %p1162_p13 = scmp.ne.s32.totalorder %s1157_s4, 0  ;;  %p1163_p3 = scmp.ne.s32.totalorder %s1160_s5, 0 }
  0x69   : > { %s232_s28 = sand.u32 (!%p1163_p3), 1, %s841_s13   ;;  %p1164_p12 = scmp.ne.s32.totalorder (!%p1163_p3), %s1156_s26, 0 }
  0x6a   : > { %626 = dma.hbm_to_vmem [thread:$0]  (!%p1162_p13), %s1018_s12, 32, %s222_s10, %s983_s27  }
  0x6b   : > { %230 = sbr.rel (%p1163_p3) target bundleno = 493 (0x1ed), region = 32  ;;  %s600_s11 = sshll.u32 (!%p1163_p3), %s232_s28, 3 }
  0x6c   : > { %s233_s23 = scalar_lea.sflag (!%p1163_p3), [#allocation5], %s232_s28  ;;  %s236_s21 = scalar_lea.vmem (!%p1163_p3), [#allocation4], %s600_s11 }
  0x72   : > { %828 = dma.done.wait (%p1164_p12), %s233_s23, 128  }
  0x73   : > { %830 = vsyncadd (%p1164_p12), %s233_s23, 4294967168  ;;  %s1165_s25 = sadd.s32 4294967295, %s865_s19   ;;  %s601_s6 = sshll.u32 %s232_s28, 1 }
  0x74   : > { %s241_s4 = sand.u32 1, %s1165_s25   ;;  %s1091_s12 = scalar_lea.vmem [#allocation6], %s601_s6 }
  0x75   : > { %s242_s27 = scalar_lea.sflag [#allocation7], %s241_s4 }
  0x76   : > { %832 = dma.done.wait (%p1164_p12), %s242_s27, 64  }
  0x77   : > { %834 = vsyncadd (%p1164_p12), %s242_s27, 4294967232  ;;  %p295_p10 = scmp.lt.s32.totalorder %s853_s16, 1  ;;  %s1104_s29 = scalar_lea.vmem [#allocation8], %s601_s6 }
  0x78   : > { %p604_p2 = scmp.ne.s32.totalorder %s849_s15, 0 }
  0x79   : > { %s1182_s16 = smov (!%p295_p10, %s853_s16), 1  ;;  %vm303_vm0 = vcmask (!%p604_p2), 3072   ;;  %v870_v0 = vmov (!%p604_p2), 0.0  }
  0x7a   : > { %s603_s5 = sshll.u32 %s1182_s16, 2  ;;  %302 = sbr.rel (%p604_p2) target bundleno = 129 (0x81), region = 48  ;;  %304 = vst.msk [vmem:[#allocation2] sm:$0xf] (!%p604_p2), %vm303_vm0, %v870_v0  ;;  %305 = vst.msk [vmem:[#allocation3] sm:$0xf] (!%p604_p2), %vm303_vm0, %v870_v0 }
  0x7b   : > { %s1102_s20 = scalar_lea.vmem %s1146_s3, %s603_s5 }
  0x81 PF: > { %v306_v1 = vld [vmem:[%s236_s21] sm:$0xff]  ;;  %vm354_vm1 = vcmask 1043456   ;;  %v308_v24 = vlaneseq  ;;  %v307_v28 = vld [vmem:[%s1091_s12] sm:$0x3]  ;;  %v871_v38 = vmov 0   ;;  %v872_v49 = vmov 0.0  }
  0x82   : > { %v352_v2 = vcombine.high %v306_v1, %v306_v1  ;;  %v355_v3 = vsel %vm354_vm1, %v306_v1, -inf  ;;  %vm310_vm2 = vcmp.ne.s32.totalorder %v307_v28, 2  ;;  %v336_v53 = vld [vmem:[%s1104_s29] sm:$0x3]  ;;  %vm428_vm9 = vcmask 3072   ;;  %p605_p7 = scmp.ne.s32.totalorder %s849_s15, 1 }
  0x83   : > { %v356_v4 = vrot.slane %v355_v3, 4  ;;  %v309_v31 = vshrl.u32 %v308_v24, 7  ;;  %v321_v39 = vsel %vm310_vm2, 1, %v871_v38  ;;  %s873_s16 = smov (!%p605_p7), 1   ;;  %vm448_vm10 = vcmask (!%p605_p7), 7168  }
  0x84   : > { %v362_v5 = vsel %vm354_vm1, %v352_v2, -inf  ;;  %vm450_vm11 = vcmask (!%p605_p7), 11264  }
  0x85   : > { %v357_v6 = vmax.f32 %v355_v3, %v356_v4  ;;  %v363_v7 = vrot.slane %v362_v5, 4  ;;  %v313_v36 = vsub.s32 0, %v309_v31  ;;  %v317_v37 = vsub.s32 1, %v309_v31 }
  0x87   : > { %v358_v8 = vrot.slane %v357_v6, 2  ;;  %v364_v9 = vmax.f32 %v362_v5, %v363_v7  ;;  %v314_v43 = vrot.slane %v307_v28, %v313_v36  ;;  %v325_v44 = vrot.slane %v321_v39, %v313_v36 }
  0x88   : > { %v318_v45 = vrot.slane %v307_v28, %v317_v37  ;;  %v329_v46 = vrot.slane %v321_v39, %v317_v37  ;;  %v340_v57 = vrot.slane %v336_v53, %v313_v36  ;;  %v344_v58 = vrot.slane %v336_v53, %v317_v37 }
  0x89   : > { %v359_v10 = vmax.f32 %v357_v6, %v358_v8  ;;  %v365_v11 = vrot.slane %v364_v9, 2  ;;  %vm319_vm3 = vcmp.eq.s32.totalorder %v309_v31, %v314_v43  ;;  %vm330_vm4 = vcmp.eq.s32.totalorder %v325_v44, 1 }
  0x8a   : > { %vm320_vm5 = vcmp.eq.s32.totalorder %v309_v31, %v318_v45  ;;  %vm331_vm6 = vcmp.eq.s32.totalorder %v329_v46, 1  ;;  %vm332_vm7 = vmand %vm319_vm3, %vm330_vm4  ;;  %v345_v61 = vshra.s32 %v340_v57, %v309_v31  ;;  %v346_v62 = vshra.s32 %v344_v58, %v309_v31 }
  0x8b   : > { %v360_v12 = vrot.slane %v359_v10, 1  ;;  %v366_v13 = vmax.f32 %v364_v9, %v365_v11  ;;  %vm333_vm8 = vmand %vm320_vm5, %vm331_vm6  ;;  %v334_v50 = vsel %vm332_vm7, 1.0, %v872_v49 }
  0x8c   : > { %v335_v51 = vsel %vm333_vm8, 1.0, %v872_v49  ;;  %v347_v0 = vand.u32 1, %v345_v61 }
  0x8d   : > { %v361_v14 = vmax.f32 %v359_v10, %v360_v12  ;;  %v367_v15 = vrot.slane %v366_v13, 1  ;;  %v403_v55 = vcombine.low %v334_v50, %v335_v51 }
  0x8e   : > { %v349_v3 = vcvt.s32.f32 %v347_v0 }
  0x8f   : > { %v368_v16 = vmax.f32 %v366_v13, %v367_v15 }
  0x91   : > { %v371_v17 = vcombine.low %v361_v14, %v368_v16  ;;  %v431_v14 = vsel %vm354_vm1, %v349_v3, 0.0 }
  0x93   : > { %v373_v18 = vsub.f32 %v306_v1, %v371_v17  ;;  %v348_v1 = vand.u32 1, %v346_v62 }
  0x95   : > { %v374_v19 = vmul.f32 1.442695, %v373_v18  ;;  %v350_v4 = vcvt.s32.f32 %v348_v1  ;;  %v413_v18 = vld [vmem:[#allocation2] sm:$0xf] }
  0x97   : > { %697 = vpow2.f32 %v374_v19  ;;  %v416_v8 = vcombine.low %v349_v3, %v350_v4  ;;  %v432_v15 = vsel %vm354_vm1, %v350_v4, 0.0 }
  0x98   : > { %v433_v17 = vadd.f32 %v432_v15, %v431_v14 }
  0xa1   : > { %v698_v20 = vpop.eup %697 }
  0xa2   : > { %v377_v21 = vcombine.high %v698_v20, %v698_v20  ;;  %v379_v22 = vsel %vm354_vm1, %v698_v20, 0.0 }
  0xa3   : > { %v380_v23 = vrot.slane %v379_v22, 4 }
  0xa4   : > { %v386_v25 = vsel %vm354_vm1, %v377_v21, 0.0  ;;  %v430_v21 = vld [vmem:[#allocation3] sm:$0xf] }
  0xa5   : > { %v381_v26 = vadd.f32 %v380_v23, %v379_v22  ;;  %v387_v27 = vrot.slane %v386_v25, 4 }
  0xa7   : > { %v382_v29 = vrot.slane %v381_v26, 2  ;;  %v388_v30 = vadd.f32 %v387_v27, %v386_v25 }
  0xa9   : > { %v383_v32 = vadd.f32 %v382_v29, %v381_v26  ;;  %v389_v33 = vrot.slane %v388_v30, 2 }
  0xab   : > { %v384_v34 = vrot.slane %v383_v32, 1  ;;  %v390_v35 = vadd.f32 %v389_v33, %v388_v30 }
  0xad   : > { %v385_v40 = vadd.f32 %v384_v34, %v383_v32  ;;  %v391_v41 = vrot.slane %v390_v35, 1 }
  0xaf   : > { %v392_v42 = vadd.f32 %v391_v41, %v390_v35  ;;  %699 = vrcp.f32 %v385_v40 }
  0xb1   : > { %701 = vrcp.f32 %v392_v42 }
  0xb9   : > { %v700_v47 = vpop.eup %699 }
  0xbb   : > { %v702_v48 = vpop.eup %701 }
  0xbc   : > { %v397_v52 = vcombine.low %v700_v47, %v702_v48 }
  0xbe   : > { %v399_v54 = vmul.f32 %v698_v20, %v397_v52 }
  0xc0   : > { %v407_v56 = vmul.f32 %v399_v54, %v399_v54  ;;  %v400_v63 = vmul.f32 2.0, %v399_v54 }
  0xc2   : > { %v408_v59 = vadd.f32 %v407_v56, %v403_v55  ;;  %v405_v2 = vmul.f32 %v403_v55, %v400_v63 }
  0xc4   : > { %v409_v60 = vadd.f32 1.0, %v408_v59  ;;  %v406_v5 = vadd.f32 1.0, %v405_v2 }
  0xc6   : > { %703 = vrcp.f32 %v409_v60 }
  0xd0   : > { %v704_v6 = vpop.eup %703 }
  0xd1   : > { %v411_v7 = vmul.f32 %v704_v6, %v406_v5 }
  0xd3   : > { %v412_v9 = vsub.f32 1.0, %v411_v7 }
  0xd5   : > { %v418_v10 = vmul.f32 %v416_v8, %v412_v9 }
  0xd7   : > { %v420_v11 = vcombine.high %v418_v10, %v418_v10  ;;  %v422_v12 = vsel %vm354_vm1, %v418_v10, 0.0 }
  0xd9   : > { %v423_v13 = vsel %vm354_vm1, %v420_v11, 0.0 }
  0xda   : > { %v424_v16 = vadd.f32 %v423_v13, %v422_v12 }
  0xdc   : > { %425 = vadd.xlane.f32.xlu0 %v424_v16 }
  0xe0   : > { %434 = vadd.xlane.f32.xlu0 %v433_v17 }
 0x169   : > { %v426_v19 = vpop.xlane.xlu0 %425 }
 0x16a   : > { %v427_v20 = vadd.f32 %v426_v19, %v413_v18  ;;  %441 = sbr.rel (%p605_p7) target bundleno = 493 (0x1ed), region = 52 }
 0x16c   : > { %429 = vst.msk [vmem:[#allocation2] sm:$0xf] %vm428_vm9, %v427_v20 }
 0x16d   : > { %v435_v22 = vpop.xlane.xlu0 %434 }
 0x16e   : > { %v436_v23 = vadd.f32 %v435_v22, %v430_v21 }
 0x170   : > { %437 = vst.msk [vmem:[#allocation3] sm:$0xf] %vm428_vm9, %v436_v23 }
 0x173   : > { %v442_v25 = vld [vmem:[#allocation2] sm:$0xf] }
 0x177   : > { %v443_v24 = vld [vmem:[#allocation3] sm:$0xf] }
 0x178   : > { %445 = vrot.lane.b32.xlu0 %v443_v24, %s873_s16 }
 0x1ea   : > { %v446_v26 = vpop.permute.xlu0 %445 }
 0x1eb   : > { %v449_v27 = vsel %vm448_vm10, %v442_v25, %v446_v26 }
 0x1ec   : > { %451 = vst.msk [vmem:[%s1102_s20] sm:$0xf] %vm450_vm11, %v449_v27 }
 0x1ed PF: > { %s19_s19 = sadd.s32 1, %s865_s19   ;;  %s1166_s26 = sld [smem:[#allocation11_spill]] }
 0x1ee   : > { %p16_p0 = scmp.ge.s32.totalorder %s19_s19, 6   ;;  %s1167_s30 = sld [smem:[#allocation12_spill]] }
 0x1ef   : > { %s1168_s12 = smov %s841_s13  ;;  %s1169_s13 = smov %s845_s14 }
 0x1f0   : > { %s1170_s14 = smov %s969_s7  ;;  %s1171_s15 = smov %s857_s17 }
 0x1f1   : > { %s1172_s16 = smov %s861_s18  ;;  %18 = sbr.rel (!%p16_p0) target bundleno = 9 (0x9), region = 104 }
 0x1f3   : > { %s1173_s17 = smov %s1166_s26 }
 0x1f4   : > { %s1174_s18 = smov %s1167_s30 }
 0x1f8   :  { %471 = vsyncpa [#allocation5], 1 }
 0x1f9   :  { %473 = vsyncpa [#allocation5 + $0x1], 1 }
 0x1fa   :  { %474 = vsyncpa [#allocation7], 1 }
 0x1fb   :  { %476 = vsyncpa [#allocation7 + $0x1], 1 }

</bundles_post_ra>
